<compile_context>
chip_gen: v5e
topology: v5e:2x2
jax: 0.10.0
libtpu: 0.0.40
codegen_flags: <defaults>
</compile_context>

<pallas_src>
import math
from typing import NamedTuple, Optional, Any

import jax
import jax.numpy as jnp
from jax.experimental import pallas as pl
from jax.experimental.pallas import tpu as pltpu


def _round_up(x: int, m: int) -> int:
    return (x + m - 1) // m * m


def _vmem_capacity_bytes() -> int:
    try:
        info = pltpu.get_tpu_info()
        cap = getattr(info, "vmem_capacity_bytes", None)
        if cap:
            return int(cap)
    except Exception:
        pass
    return 128 * 1024 * 1024  # v5e/v6e default; v7x reported by get_tpu_info


def _tile_footprint_bytes(tm, tn, tk, r, in_bytes, out_bytes):
    """Per-step VMEM use: double-buffered in/out tiles + f32 accumulator."""
    def pad(rows, cols, b):
        return _round_up(max(rows, 1), 8) * _round_up(max(cols, 1), 128) * b
    buffers = (pad(tm, tk, in_bytes)       # x tile
               + pad(tk, tn, in_bytes)     # W tile
               + pad(1, tn, 4)             # bias tile (f32)
               + pad(tm, r, in_bytes)      # LoRA intermediate (x @ A)
               + pad(r, tn, in_bytes)      # scaled B tile
               + pad(tm, tn, out_bytes))   # output tile
    return 2 * buffers + pad(tm, tn, 4)    # double-buffering + acc scratch


# --------------------------------------------------------------------------
# Kernel: grid = (M tiles, N tiles, K tiles).  K is the innermost reduction
# axis; the f32 accumulator lives in VMEM scratch and the output tile is
# written once, on the last K step (bias + LoRA epilogue folded there).
# --------------------------------------------------------------------------
def _lora_kernel(x_ref, w_ref, b_ref, i_ref, bb_ref, o_ref, acc_ref):
    k = pl.program_id(2)

    @pl.when(k == 0)
    def _():
        acc_ref[...] = jnp.zeros_like(acc_ref)

    acc_ref[...] += jnp.dot(x_ref[...], w_ref[...],
                            preferred_element_type=jnp.float32)

    @pl.when(k == pl.num_programs(2) - 1)
    def _():
        acc = acc_ref[...] + b_ref[...]                       # bias (1, tn) f32
        # LoRA epilogue: inter (tm, r) @ B_scaled (r, tn); alpha/r pre-folded.
        acc = acc + jnp.dot(i_ref[...], bb_ref[...],
                            preferred_element_type=jnp.float32)
        o_ref[...] = acc.astype(o_ref.dtype)


# --------------------------------------------------------------------------
# One-time parameter preparation (cache this next to the frozen weights).
# --------------------------------------------------------------------------
class LoraParams(NamedTuple):
    w_t: jax.Array        # (K_pad, N_pad) compute_dtype, weight.T, zero-padded
    bias2d: jax.Array     # (1, N_pad) float32
    a_t: jax.Array        # (K, r) compute_dtype (used wrapper-side for x @ A)
    b_scaled: jax.Array   # (r, N_pad) compute_dtype, (lora_B.T * alpha/r)
    K: int
    N: int
    r: int
    K_pad: int
    N_pad: int
    tk: int
    tn: int
    compute_dtype: Any


def prepare_lora_params(weight, bias, lora_A, lora_B, *, alpha, r,
                        compute_dtype=jnp.bfloat16,
                        tn: int = 256, tk: Optional[int] = None,
                        tm_hint: int = 512) -> LoraParams:
    """Hoists all per-parameter layout work (transpose / cast / pad / scale
    fold) out of the forward call path.  Call once per layer and reuse."""
    N, K = weight.shape
    assert lora_A.shape == (r, K)
    assert lora_B.shape == (N, r)
    if bias is not None:
        assert bias.shape == (N,)
    scaling = alpha / r

    in_bytes = jnp.dtype(compute_dtype).itemsize
    out_bytes = 4
    budget = int(0.8 * _vmem_capacity_bytes())

    # Lane-dense output: always pad N to a 128 multiple, pick tn accordingly.
    N_pad = _round_up(N, 128)
    tn_req = max(128, _round_up(tn, 128))
    tn_sel = 128
    for cand in (512, 384, 256, 128):
        if cand <= tn_req and N_pad % cand == 0:
            tn_sel = cand
            break

    # K tiling: keep full K per block unless the streamed tiles threaten the
    # VMEM budget (mainly v7x's 64 MiB VMEM with large K).
    if tk is not None and tk < K:
        tk_sel = max(128, _round_up(tk, 128))
    elif _tile_footprint_bytes(tm_hint, tn_sel, K, r,
                               in_bytes, out_bytes) <= budget // 2:
        tk_sel = K
    else:
        tk_sel = 128
        for cand in (2048, 1024, 512, 256, 128):
            if cand < _round_up(K, 128) and _tile_footprint_bytes(
                    tm_hint, tn_sel, cand, r, in_bytes, out_bytes) <= budget // 2:
                tk_sel = cand
                break
    if tk_sel >= K:
        tk_sel = K
        K_pad = K
    else:
        K_pad = _round_up(K, tk_sel)

    w_t = weight.T.astype(compute_dtype)                    # (K, N), lane-dense N
    b_scaled = (lora_B.T * scaling).astype(compute_dtype)   # (r, N), alpha/r folded
    bias_f32 = (jnp.zeros((N,), jnp.float32) if bias is None
                else bias.astype(jnp.float32))
    bias2d = bias_f32.reshape(1, N)
    a_t = lora_A.T.astype(compute_dtype)                    # (K, r)

    if N_pad != N:
        w_t = jnp.pad(w_t, ((0, 0), (0, N_pad - N)))
        b_scaled = jnp.pad(b_scaled, ((0, 0), (0, N_pad - N)))
        bias2d = jnp.pad(bias2d, ((0, 0), (0, N_pad - N)))
    if K_pad != K:
        w_t = jnp.pad(w_t, ((0, K_pad - K), (0, 0)))

    return LoraParams(w_t, bias2d, a_t, b_scaled, K, N, r,
                      K_pad, N_pad, tk_sel, tn_sel, compute_dtype)


# --------------------------------------------------------------------------
# Forward call with prepared parameters.
# --------------------------------------------------------------------------
def lora_linear_prepared(x, p: LoraParams, *, tm: int = 512, out_dtype=None):
    """x: (..., in_features) -> (..., out_features)."""
    assert x.shape[-1] == p.K
    lead = x.shape[:-1]
    x2d = x.reshape(-1, p.K)
    M = x2d.shape[0]
    out_dtype = x.dtype if out_dtype is None else out_dtype

    in_bytes = jnp.dtype(p.compute_dtype).itemsize
    out_bytes = jnp.dtype(out_dtype).itemsize
    budget = int(0.8 * _vmem_capacity_bytes())

    # Row tile: multiple of 16 (bf16 sublane packing), shrunk to fit VMEM / M.
    tm_sel = min(_round_up(max(tm, 16), 16), _round_up(M, 16))
    while tm_sel > 16 and _tile_footprint_bytes(
            tm_sel, p.tn, p.tk, p.r, in_bytes, out_bytes) > budget:
        tm_sel = max(16, _round_up(tm_sel // 2, 16))
    M_pad = _round_up(M, tm_sel)

    x_c = x2d.astype(p.compute_dtype)
    # LoRA intermediate once per call (rank r << N), not once per N tile.
    inter = jnp.dot(x_c, p.a_t,
                    preferred_element_type=jnp.float32).astype(p.compute_dtype)
    if M_pad != M:
        x_c = jnp.pad(x_c, ((0, M_pad - M), (0, 0)))
        inter = jnp.pad(inter, ((0, M_pad - M), (0, 0)))
    if p.K_pad != p.K:
        x_c = jnp.pad(x_c, ((0, 0), (0, p.K_pad - p.K)))

    grid = (M_pad // tm_sel, p.N_pad // p.tn, p.K_pad // p.tk)
    vmem_limit = min(budget, int(1.25 * _tile_footprint_bytes(
        tm_sel, p.tn, p.tk, p.r, in_bytes, out_bytes)))
    vmem_limit = max(vmem_limit, 4 * 1024 * 1024)

    out = pl.pallas_call(
        _lora_kernel,
        out_shape=jax.ShapeDtypeStruct((M_pad, p.N_pad), out_dtype),
        grid_spec=pltpu.PrefetchScalarGridSpec(
            num_scalar_prefetch=0,
            grid=grid,
            in_specs=[
                pl.BlockSpec((tm_sel, p.tk), lambda i, j, k: (i, k)),  # x
                pl.BlockSpec((p.tk, p.tn), lambda i, j, k: (k, j)),    # W (pre-T)
                pl.BlockSpec((1, p.tn), lambda i, j, k: (0, j)),       # bias
                pl.BlockSpec((tm_sel, p.r), lambda i, j, k: (i, 0)),   # x @ A
                pl.BlockSpec((p.r, p.tn), lambda i, j, k: (0, j)),     # B (scaled)
            ],
            out_specs=pl.BlockSpec((tm_sel, p.tn), lambda i, j, k: (i, j)),
            scratch_shapes=[pltpu.VMEM((tm_sel, p.tn), jnp.float32)],
        ),
        compiler_params=pltpu.CompilerParams(
            dimension_semantics=("parallel", "parallel", "arbitrary"),
            vmem_limit_bytes=int(vmem_limit),
        ),
    )(x_c, p.w_t, p.bias2d, inter, p.b_scaled)

    y = out[:M, :p.N]
    return y.reshape(lead + (p.N,))


def lora_linear(x, weight, bias, lora_A, lora_B, *, alpha, r,
                tm=512, tn=256, tk=None, compute_dtype=jnp.bfloat16,
                out_dtype=None):
    """Convenience one-shot wrapper.  For repeated calls, build the params
    once with prepare_lora_params() and reuse lora_linear_prepared()."""
    p = prepare_lora_params(weight, bias, lora_A, lora_B, alpha=alpha, r=r,
                            compute_dtype=compute_dtype, tn=tn, tk=tk,
                            tm_hint=tm)
    return lora_linear_prepared(x, p, tm=tm, out_dtype=out_dtype)


def lora_linear_ref(x, weight, bias, lora_A, lora_B, *, alpha, r,
                    compute_dtype=jnp.bfloat16):
    """Pure-JAX reference matching the kernel's operand quantization."""
    scaling = alpha / r
    hi = jax.lax.Precision.HIGHEST
    xc = x.reshape(-1, x.shape[-1]).astype(compute_dtype).astype(jnp.float32)
    wc = weight.astype(compute_dtype).astype(jnp.float32)
    ac = lora_A.astype(compute_dtype).astype(jnp.float32)
    bc = (lora_B.T * scaling).astype(compute_dtype).astype(jnp.float32)
    orig = jnp.dot(xc, wc.T, precision=hi)
    if bias is not None:
        orig = orig + bias.astype(jnp.float32)
    inter = jnp.dot(xc, ac.T, precision=hi)
    inter = inter.astype(compute_dtype).astype(jnp.float32)
    out = orig + jnp.dot(inter, bc, precision=hi)
    return out.reshape(x.shape[:-1] + (weight.shape[0],))


if __name__ == "__main__":
    # Small but multi-tile, ragged shapes: exercises M/N/K tiling, padding,
    # the K-reduction accumulator, and lane-dense padded stores.
    batch, seq = 2, 25                 # M = 50 (ragged vs 16)
    in_features, out_features = 160, 200   # ragged vs 128
    r, alpha = 4, 8.0

    key = jax.random.PRNGKey(0)
    kx, kw, kb, ka, kbb = jax.random.split(key, 5)

    x = jax.random.normal(kx, (batch, seq, in_features), dtype=jnp.float32)

    # Frozen original linear params (PyTorch default-ish uniform init).
    bound_w = 1.0 / math.sqrt(in_features)
    weight = jax.random.uniform(kw, (out_features, in_features),
                                minval=-bound_w, maxval=bound_w,
                                dtype=jnp.float32)
    bias = jax.random.uniform(kb, (out_features,),
                              minval=-bound_w, maxval=bound_w,
                              dtype=jnp.float32)

    # lora_A: kaiming_uniform(a=sqrt(5)) -> bound = 1/sqrt(in_features)
    lora_A = jax.random.uniform(ka, (r, in_features),
                                minval=-bound_w, maxval=bound_w,
                                dtype=jnp.float32)
    # Module init sets lora_B to zeros; use small random values so the LoRA
    # matmul path is numerically exercised (deterministic synthetic weights).
    lora_B = 0.01 * jax.random.normal(kbb, (out_features, r), dtype=jnp.float32)

    # One-time parameter preparation (would be cached alongside the layer).
    params = prepare_lora_params(weight, bias, lora_A, lora_B,
                                 alpha=alpha, r=r,
                                 compute_dtype=jnp.bfloat16,
                                 tn=128, tk=128)   # small tiles -> multi-tile grid

    y = lora_linear_prepared(x, params, tm=16)     # grid (4, 2, 2)
    y = jax.block_until_ready(y)

    y_ref = lora_linear_ref(x, weight, bias, lora_A, lora_B,
                            alpha=alpha, r=r, compute_dtype=jnp.bfloat16)

    assert y.shape == (batch, seq, out_features)
    assert bool(jnp.all(jnp.isfinite(y)))
    assert jnp.allclose(y.astype(jnp.float32),
                        y_ref.reshape(y.shape).astype(jnp.float32),
                        atol=2e-3, rtol=2e-3), "mismatch vs reference"

    print("KERNEL_OK")
</pallas_src>

<mosaic_0001>
module attributes {stable_mosaic.version = 11 : i64} {
  func.func @_lora_kernel(%arg0: i32, %arg1: i32, %arg2: i32, %arg3: memref<16x128xbf16, #tpu.memory_space<vmem>>, %arg4: memref<128x128xbf16, #tpu.memory_space<vmem>>, %arg5: memref<1x128xf32, #tpu.memory_space<vmem>>, %arg6: memref<16x4xbf16, #tpu.memory_space<vmem>>, %arg7: memref<4x128xbf16, #tpu.memory_space<vmem>>, %arg8: memref<16x128xf32, #tpu.memory_space<vmem>>, %arg9: memref<16x128xf32, #tpu.memory_space<vmem>>) attributes {dimension_semantics = [#tpu.dimension_semantics<parallel>, #tpu.dimension_semantics<parallel>, #tpu.dimension_semantics<arbitrary>], iteration_bounds = array<i64: 4, 2, 2>, scalar_prefetch = 0 : i64, scratch_operands = 1 : i64, tpu.core_type = #tpu.core_type<tc>, window_params = [{transform_indices = @transform_0, window_bounds = array<i64: 16, 128>}, {transform_indices = @transform_1, window_bounds = array<i64: 128, 128>}, {transform_indices = @transform_2, window_bounds = array<i64: 1, 128>}, {transform_indices = @transform_3, window_bounds = array<i64: 16, 4>}, {transform_indices = @transform_4, window_bounds = array<i64: 4, 128>}, {transform_indices = @transform_5, window_bounds = array<i64: 16, 128>}]} {
    %c0_i32 = arith.constant 0 : i32
    %0 = arith.cmpi eq, %arg2, %c0_i32 : i32
    %1 = arith.extui %0 : i1 to i32
    %c0_i32_0 = arith.constant 0 : i32
    %2 = arith.cmpi ne, %1, %c0_i32_0 : i32
    scf.if %2 {
      %cst_9 = arith.constant 0.000000e+00 : f32
      %12 = vector.broadcast %cst_9 : f32 to vector<16x128xf32>
      %c0_10 = arith.constant 0 : index
      %c0_11 = arith.constant 0 : index
      %13 = vector.load %arg9[%c0_10, %c0_11] : memref<16x128xf32, #tpu.memory_space<vmem>>, vector<16x128xf32>
      tpu.vector_store %arg9[%c0_10, %c0_11], %12 {strides = array<i32>} : memref<16x128xf32, #tpu.memory_space<vmem>>, vector<16x128xf32>,
    } else {
    }
    %c0 = arith.constant 0 : index
    %c0_1 = arith.constant 0 : index
    %3 = vector.load %arg9[%c0, %c0_1] : memref<16x128xf32, #tpu.memory_space<vmem>>, vector<16x128xf32>
    %c0_2 = arith.constant 0 : index
    %c0_3 = arith.constant 0 : index
    %4 = vector.load %arg3[%c0_2, %c0_3] : memref<16x128xbf16, #tpu.memory_space<vmem>>, vector<16x128xbf16>
    %c0_4 = arith.constant 0 : index
    %c0_5 = arith.constant 0 : index
    %5 = vector.load %arg4[%c0_4, %c0_5] : memref<128x128xbf16, #tpu.memory_space<vmem>>, vector<128x128xbf16>
    %cst = arith.constant dense<0.000000e+00> : vector<16x128xf32>
    %6 = tpu.matmul %4, %5, %cst {dimension_numbers = #tpu.dot_dimension_numbers<[1], [0], [0], [1], [0, 0, 1, 1], [], []>} : vector<16x128xbf16>, vector<128x128xbf16>, vector<16x128xf32> -> vector<16x128xf32>
    %7 = arith.addf %3, %6 : vector<16x128xf32>
    %c0_6 = arith.constant 0 : index
    %c0_7 = arith.constant 0 : index
    %8 = vector.load %arg9[%c0_6, %c0_7] : memref<16x128xf32, #tpu.memory_space<vmem>>, vector<16x128xf32>
    tpu.vector_store %arg9[%c0_6, %c0_7], %7 {strides = array<i32>} : memref<16x128xf32, #tpu.memory_space<vmem>>, vector<16x128xf32>,
    %c1_i32 = arith.constant 1 : i32
    %9 = arith.cmpi eq, %arg2, %c1_i32 : i32
    %10 = arith.extui %9 : i1 to i32
    %c0_i32_8 = arith.constant 0 : i32
    %11 = arith.cmpi ne, %10, %c0_i32_8 : i32
    scf.if %11 {
      %c0_9 = arith.constant 0 : index
      %c0_10 = arith.constant 0 : index
      %12 = vector.load %arg9[%c0_9, %c0_10] : memref<16x128xf32, #tpu.memory_space<vmem>>, vector<16x128xf32>
      %c0_11 = arith.constant 0 : index
      %c0_12 = arith.constant 0 : index
      %13 = vector.load %arg5[%c0_11, %c0_12] : memref<1x128xf32, #tpu.memory_space<vmem>>, vector<1x128xf32>
      %14 = vector.broadcast %13 : vector<1x128xf32> to vector<16x128xf32>
      %15 = arith.addf %12, %14 : vector<16x128xf32>
      %c0_13 = arith.constant 0 : index
      %c0_14 = arith.constant 0 : index
      %16 = vector.load %arg6[%c0_13, %c0_14] : memref<16x4xbf16, #tpu.memory_space<vmem>>, vector<16x4xbf16>
      %c0_15 = arith.constant 0 : index
      %c0_16 = arith.constant 0 : index
      %17 = vector.load %arg7[%c0_15, %c0_16] : memref<4x128xbf16, #tpu.memory_space<vmem>>, vector<4x128xbf16>
      %cst_17 = arith.constant dense<0.000000e+00> : vector<16x128xf32>
      %18 = tpu.matmul %16, %17, %cst_17 {dimension_numbers = #tpu.dot_dimension_numbers<[1], [0], [0], [1], [0, 0, 1, 1], [], []>} : vector<16x4xbf16>, vector<4x128xbf16>, vector<16x128xf32> -> vector<16x128xf32>
      %19 = arith.addf %15, %18 : vector<16x128xf32>
      %c0_18 = arith.constant 0 : index
      %c0_19 = arith.constant 0 : index
      %20 = vector.load %arg8[%c0_18, %c0_19] : memref<16x128xf32, #tpu.memory_space<vmem>>, vector<16x128xf32>
      tpu.vector_store %arg8[%c0_18, %c0_19], %19 {strides = array<i32>} : memref<16x128xf32, #tpu.memory_space<vmem>>, vector<16x128xf32>,
    } else {
    }
    return
  }
  func.func @transform_0(%arg0: i32, %arg1: i32, %arg2: i32) -> (i32, i32) {
    %c0_i32 = arith.constant 0 : i32
    return %arg0, %arg2 : i32, i32
  }
  func.func @transform_1(%arg0: i32, %arg1: i32, %arg2: i32) -> (i32, i32) {
    %c0_i32 = arith.constant 0 : i32
    return %arg2, %arg1 : i32, i32
  }
  func.func @transform_2(%arg0: i32, %arg1: i32, %arg2: i32) -> (i32, i32) {
    %c0_i32 = arith.constant 0 : i32
    %c0_i32_0 = arith.constant 0 : i32
    return %c0_i32, %arg1 : i32, i32
  }
  func.func @transform_3(%arg0: i32, %arg1: i32, %arg2: i32) -> (i32, i32) {
    %c0_i32 = arith.constant 0 : i32
    %c0_i32_0 = arith.constant 0 : i32
    return %arg0, %c0_i32 : i32, i32
  }
  func.func @transform_4(%arg0: i32, %arg1: i32, %arg2: i32) -> (i32, i32) {
    %c0_i32 = arith.constant 0 : i32
    %c0_i32_0 = arith.constant 0 : i32
    return %c0_i32, %arg1 : i32, i32
  }
  func.func @transform_5(%arg0: i32, %arg1: i32, %arg2: i32) -> (i32, i32) {
    %c0_i32 = arith.constant 0 : i32
    return %arg0, %arg1 : i32, i32
  }
}

</mosaic_0001>

<bundles_post_ra>
// kernel: tpu_custom_call.1
= control target key start
LH: loop header
LB: loop body
LE: loop exit
PB: predicated region body
PF: predicated region fallthrough
CT: control target
= control target key end

     0   :  { %s1539_s0 = inlined_call_operand.hbm [shape: bf16[64,256], index: 0, kind: input, shape index: {}]   ;;  %s1540_s1 = inlined_call_operand.hbm [shape: bf16[256,256], index: 1, kind: input, shape index: {}]   ;;  %s1541_s2 = inlined_call_operand.vmem [shape: f32[1,256], index: 2, kind: input, shape index: {}]   ;;  %s1542_s3 = inlined_call_operand.vmem [shape: bf16[64,4], index: 3, kind: input, shape index: {}]   ;;  %s1543_s4 = inlined_call_operand.vmem [shape: bf16[4,256], index: 4, kind: input, shape index: {}]   ;;  %s1544_s5 = inlined_call_operand.hbm [shape: f32[64,256], index: 5, kind: output, shape index: {}]  }
   0x1   :  { %1559 = sst [smem:[#allocation24_spill]] %s1539_s0 }
   0x2   :  { %1560 = sst [smem:[#allocation25_spill]] %s1540_s1 }
   0x3   :  { %1561 = sst [smem:[#allocation26_spill]] %s1541_s2 }
   0x4   :  { %1562 = sst [smem:[#allocation27_spill]] %s1542_s3 }
   0x5   :  { %1563 = sst [smem:[#allocation28_spill]] %s1543_s4 }
   0x6   :  { %1564 = sst [smem:[#allocation29_spill]] %s1544_s5 }
   0x7   :  { %10 = vsyncpa [#allocation4], 0 }
   0x8   :  { %12 = vsyncpa [#allocation4 + $0x1], 0 }
   0x9   :  { %13 = vsyncpa [#allocation7], 0 }
   0xa   :  { %15 = vsyncpa [#allocation7 + $0x1], 0 }
   0xb   :  { %16 = vsyncpa [#allocation5], 0 }
   0xc   :  { %18 = vsyncpa [#allocation5 + $0x1], 0  ;;  %s1188_s18 = smov 0   ;;  %s1190_s19 = smov 0  }
   0xd   :  { %s1192_s20 = smov 0   ;;  %s1194_s21 = smov 0  }
   0xe   :  { %s1196_s22 = smov 0   ;;  %s1198_s23 = smov 0  }
   0xf   :  { %s1200_s24 = smov 0   ;;  %s1202_s25 = smov 0  }
  0x10   :  { %s1204_s26 = smov 0   ;;  %s1206_s27 = smov 0  }
  0x11   :  { %s1208_s28 = smov 0   ;;  %s1210_s29 = smov 0  }
  0x12   :  { %s1212_s30 = smov 0   ;;  %s1214_s6 = smov 0  }
  0x13   :  { %s1216_s7 = smov 0   ;;  %s1218_s8 = smov 0  }
  0x14 LB: > { %1565 = sst [smem:[#allocation12_spill]] %s1121_s26  ;;  %s687_s9 = sadd.s32 4294967295, %s1149_s8   ;;  %s1149_s8 = sphi %s1218_s8, %s24_s8   ;;  %s1145_s7 = sphi %s1216_s7, %s1629_s7   ;;  %s1141_s6 = sphi %s1214_s6, %s1616_s6   ;;  %s1137_s30 = sphi %s1212_s30, %s1628_s30   ;;  %s1133_s29 = sphi %s1210_s29, %s1627_s29   ;;  %s1129_s28 = sphi %s1208_s28, %s1613_s28   ;;  %s1125_s27 = sphi %s1206_s27, %s1626_s27   ;;  %s1121_s26 = sphi %s1204_s26, %s1612_s26   ;;  %s1117_s25 = sphi %s1202_s25, %s1625_s25   ;;  %s1113_s24 = sphi %s1200_s24, %s1624_s24   ;;  %s1109_s23 = sphi %s1198_s23, %s1623_s23   ;;  %s1105_s22 = sphi %s1196_s22, %s1622_s22   ;;  %s1101_s21 = sphi %s1194_s21, %s1621_s21   ;;  %s1097_s20 = sphi %s1192_s20, %s1620_s20   ;;  %s1093_s19 = sphi %s1190_s19, %s1619_s19   ;;  %s1089_s18 = sphi %s1188_s18, %s1618_s18  }
  0x15   : > { %1566 = sst [smem:[#allocation13_spill]] %s1125_s27  ;;  %s36_s10 = sadd.s32 1, %s1137_s30 }
  0x16   : > { %1567 = sst [smem:[#allocation14_spill]] %s1129_s28  ;;  %p1268_p0 = scmp.ge.s32.totalorder %s36_s10, 2 }
  0x17   : > { %1568 = sst [smem:[#allocation15_spill]] %s1133_s29  ;;  %p59_p1 = scmp.ne.s32.totalorder %s1121_s26, %s1117_s25 }
  0x18   : > { %1569 = sst [smem:[#allocation16_spill]] %s1141_s6  ;;  %s1631_s10 = smov (%p1268_p0, %s36_s10), 0 }
  0x19   : > { %1570 = sst [smem:[#allocation17_spill]] %s1145_s7  ;;  %p60_p2 = scmp.eq.s32.totalorder %s1149_s8, 0 }
  0x1a   : > { %1572 = sst [smem:[#allocation18_spill]] %s1631_s10  ;;  %p65_p3 = scmp.ne.s32.totalorder %s1117_s25, %s1113_s24 }
  0x1b   : > { %s1284_s14 = ssub.s32 %s1137_s30, %s1631_s10  ;;  %p1286_p4 = scmp.eq.s32.totalorder %s687_s9, 0 }
  0x1c   : > { %p1292_p5 = por %p60_p2, %p59_p1  ;;  %p1296_p6 = scmp.eq.s32.totalorder %s687_s9, 15 }
  0x1d   : > { %p1302_p7 = por %p1286_p4, %p65_p3  ;;  %p785_p8 = scmp.lt.s32.totalorder %s1149_s8, 16 }
  0x1e   : > { %s223_s13 = sand.u32 1, %s1121_s26   ;;  %s755_s10 = sshll.u32 %s1145_s7, 2 }
  0x1f   : > { %s691_s12 = sshll.u32 %s223_s13, 3  ;;  %s232_s5 = sadd.s32 %s1137_s30, %s755_s10 }
  0x20   : > { %s227_s27 = scalar_lea.vmem [#allocation3], %s691_s12  ;;  %s694_s9 = sshll.u32 %s232_s5, 2 }
  0x21   : > { %s237_s3 = sshll.u32 %s227_s27, 4  ;;  %s1577_s0 = sld [smem:[#allocation24_spill]]  ;;  %s238_s3 = int_to_ptr.vmem [resolvable:$true] %s237_s3 }
  0x22   : > { %p775_p9 = pnand %p785_p8, %p1292_p5  ;;  %s224_s27 = scalar_lea.sflag [#allocation4], %s223_s13 }
  0x23   : > { %s1548_s5 = smov 128   ;;  %s1549_s12 = smov 64  }
  0x24   : > { %s1550_s28 = smov 4   ;;  %p699_p10 = scmp.ge.s32.totalorder %s1149_s8, 1 }
  0x25   : > { %p291_p11 = scmp.lt.s32.totalorder %s1149_s8, 17  ;;  %s688_s4 = sadd.s32 4294967294, %s1149_s8  }
  0x26   : > { %s80_s13 = sadd.s32 1, %s1109_s23  ;;  %p87_p13 = scmp.ne.s32.totalorder %s1109_s23, %s1105_s22 }
  0x27   : > { %s234_s29 = scalar_lea.hbm %s1577_s0, %s694_s9  ;;  %p1322_p12 = pnand %p699_p10, %p291_p11 }
  0x28   : > { %s235_s10 = sshll.u32 %s234_s29, 4  ;;  %s39_s29 = sadd.s32 1, %s1141_s6  ;;  %s236_s10 = int_to_ptr.hbm [resolvable:$true] %s235_s10 }
  0x29   : > { %777 = dma.hbm_to_vmem [thread:$0]  (!%p775_p9), %s236_s10, 128, %s238_s3, %s224_s27, %s1548_s5, %s1549_s12, %s1550_s28  }
  0x2a   : > { %s1633_s29 = smov (!%p1268_p0, %s39_s29), %s1141_s6  ;;  %p93_p1 = scmp.ne.s32.totalorder %s1105_s22, %s1101_s21 }
  0x2b   : > { %p41_p3 = scmp.ge.s32.totalorder %s1633_s29, 2  ;;  %s186_s3 = sadd.s32 1, %s1097_s20 }
  0x2c   : > { %p1339_p5 = por %p87_p13, %p60_p2  ;;  %p1345_p9 = por %p93_p1, %p1286_p4 }
  0x2d   : > { %s1635_s29 = smov (%p41_p3, %s1633_s29), 0  ;;  %s1582_s11 = sadd.s32 1, %s1145_s7 }
  0x2e   : > { %1581 = sst [smem:[#allocation19_spill]] %s1635_s29  ;;  %s1637_s11 = smov (!%p41_p3, %s1582_s11), %s1145_s7 }
  0x2f   : > { %s76_s21 = ssub.s32 %s1141_s6, %s1635_s29  ;;  %p196_p0 = scmp.ne.s32.totalorder %s1097_s20, %s1093_s19 }
  0x30   : > { %p45_p2 = scmp.ge.s32.totalorder %s1637_s11, 4  ;;  %s77_s10 = sor.u32 %s76_s21, %s1284_s14 }
  0x31   : > { %p78_p10 = scmp.eq.s32.totalorder %s77_s10, 0  ;;  %p1361_p4 = por %p1296_p6, %p196_p0 }
  0x32   : > { %s1639_s11 = smov (%p45_p2, %s1637_s11), 0  ;;  %p202_p11 = scmp.ne.s32.totalorder %s1093_s19, %s1089_s18 }
  0x33   : > { %s1583_s15 = scalar_select %p1361_p4, 1, 0 }
  0x34   : > { %1585 = sst [smem:[#allocation21_spill]] %s1639_s11  ;;  %s47_s5 = ssub.s32 %s1145_s7, %s1639_s11 }
  0x35   : > { %1584 = sst [smem:[#allocation20_spill]] %s1583_s15  ;;  %s49_s12 = sor.u32 %s1284_s14, %s47_s5 }
  0x36   : > { %s1368_s27 = scalar_select %p78_p10, %s1109_s23, %s80_s13  }
  0x37   : > { %s183_s28 = sor.u32 %s76_s21, %s47_s5  ;;  %p50_p13 = scmp.eq.s32.totalorder %s49_s12, 0 }
  0x38   : > { %1586 = sst [smem:[#allocation22_spill]] %s1368_s27  ;;  %p184_p1 = scmp.eq.s32.totalorder %s183_s28, 0 }
  0x39   : > { %p203_p3 = scmp.eq.s32.totalorder %s688_s4, 15  ;;  %s247_s17 = sand.u32 1, %s1109_s23  }
  0x3a   : > { %s1587_s10 = sadd.s32 1, %s1121_s26  ;;  %s695_s13 = sshll.u32 %s247_s17, 6 }
  0x3b   : > { %s1379_s0 = scalar_select %p50_p13, %s1121_s26, %s1587_s10  }
  0x3c   : > { %s1382_s29 = scalar_select %p184_p1, %s1097_s20, %s186_s3  }
  0x3d   : > { %1588 = sst [smem:[#allocation23_spill]] %s1379_s0  ;;  %p1384_p6 = por %p203_p3, %p202_p11 }
  0x3e   : > { %s756_s11 = sshll.u32 %s1137_s30, 5  ;;  %s251_s5 = scalar_lea.vmem [#allocation6], %s695_s13 }
  0x3f   : > { %s256_s7 = sadd.s32 %s1141_s6, %s756_s11  ;;  %s261_s12 = sshll.u32 %s251_s5, 4  ;;  %s262_s12 = int_to_ptr.vmem [resolvable:$true] %s261_s12 }
  0x40   : > { %s698_s14 = sshll.u32 %s256_s7, 2  ;;  %s1590_s1 = sld [smem:[#allocation25_spill]] }
  0x41   : > { %p778_p0 = pnand %p785_p8, %p1339_p5  ;;  %s248_s3 = scalar_lea.sflag [#allocation7], %s247_s17 }
  0x42   : > { %s1591_s10 = smov 4   ;;  %s1592_s0 = smov 64  }
  0x43   : > { %s1593_s26 = smov 128   ;;  %s297_s7 = sand.u32 (!%p1322_p12), 1, %s1117_s25  }
  0x44   : > { %295 = sbr.rel (%p1322_p12) target bundleno = 435 (0x1b3), region = 40  ;;  %s1403_s11 = sshll.u32 (!%p1322_p12), %s297_s7, 3 }
  0x45   : > { %s298_s27 = scalar_lea.sflag (!%p1322_p12), [#allocation4], %s297_s7 }
  0x46   : > { %s258_s28 = scalar_lea.hbm %s1590_s1, %s698_s14 }
  0x47   : > { %s259_s4 = sshll.u32 %s258_s28, 4  ;;  %s260_s4 = int_to_ptr.hbm [resolvable:$true] %s259_s4 }
  0x48   : > { %780 = dma.hbm_to_vmem [thread:$0]  (!%p778_p0), %s260_s4, 1024, %s262_s12, %s248_s3, %s1593_s26, %s1592_s0, %s1591_s10  }
  0x49   : > { %1076 = dma.done.wait (%p1302_p7), %s298_s27, 128  }
  0x4a   : > { %1078 = vsyncadd (%p1302_p7), %s298_s27, 4294967168  ;;  %s307_s16 = sand.u32 1, %s1105_s22  }
  0x4b   : > { %s701_s0 = sshll.u32 %s307_s16, 6  ;;  %s308_s26 = scalar_lea.sflag [#allocation7], %s307_s16 }
  0x4c   : > { %s1411_s2 = scalar_lea.vmem [#allocation6], %s701_s0 }
  0x4d   : > { %1080 = dma.done.wait (%p1345_p9), %s308_s26, 1024  }
  0x4e   : > { %1082 = vsyncadd (%p1345_p9), %s308_s26, 4294966272  ;;  %s1594_s17 = sld [smem:[#allocation14_spill]]  ;;  %s1557_s5 = sand.u32 1, %s1093_s19  }
  0x4f   : > { %s1595_s14 = sld [smem:[#allocation15_spill]]  ;;  %s702_s24 = sshll.u32 %s1557_s5, 4 }
  0x50   : > { %s1596_s9 = sld [smem:[#allocation26_spill]]  ;;  %s1440_s1 = scalar_lea.vmem [#allocation8], %s702_s24 }
  0x51   : > { %s1597_s16 = sld [smem:[#allocation28_spill]] }
  0x52   : > { %s1599_s6 = sld [smem:[#allocation13_spill]] }
  0x54   : > { %p358_p8 = scmp.lt.s32.totalorder %s1594_s17, 1 }
  0x55   : > { %s703_s12 = sshll.u32 %s1595_s14, 1  ;;  %s1598_s14 = sld [smem:[#allocation27_spill]] }
  0x56   : > { %p362_p7 = scmp.lt.s32.totalorder %s703_s12, 7  ;;  %s1641_s17 = smov (!%p358_p8, %s1594_s17), 1 }
  0x57   : > { %s360_s4 = scalar_lea.vmem %s1596_s9, %s1641_s17  ;;  %s705_s3 = sshll.u32 %s1641_s17, 1 }
  0x58   : > { %s1643_s12 = smov (!%p362_p7, %s703_s12), 7  ;;  %s1433_s0 = scalar_lea.vmem %s1597_s16, %s705_s3 }
  0x59   : > { %s704_s10 = sshll.u32 %s1643_s12, 2  ;;  %p706_p12 = scmp.ne.s32.totalorder %s1599_s6, 0 }
  0x5b   : > { %s1438_s13 = scalar_lea.vmem %s1598_s14, %s704_s10  ;;  %376 = sbr.rel (%p706_p12) target bundleno = 99 (0x63), region = 52 }
  0x60   : > { %v1154_v0 = vmov 0.0  }
  0x61   : > { %377 = vst [vmem:[#allocation2] sm:$0xff] %v1154_v0 }
  0x62   : > { %378 = vst [vmem:[#allocation2 + $0x8] sm:$0xff] %v1154_v0 }
  0x63 PF: > { %v765_v1 = vld [vmem:[%s1411_s2 + $0x38] sm:$0xff]  ;;  %v764_v2 = vld [vmem:[%s1411_s2 + $0x30] sm:$0xff]  ;;  %v763_v3 = vld [vmem:[%s1411_s2 + $0x28] sm:$0xff]  ;;  %s1600_s6 = scalar_lea.vmem [#allocation3], %s1403_s11  ;;  %s1601_s5 = sld [smem:[#allocation13_spill]] }
  0x64   : > { %453 = vmatpush.bf16.msra.mxu0 %v765_v1  ;;  %v762_v4 = vld [vmem:[%s1411_s2 + $0x20] sm:$0xff]  ;;  %v761_v5 = vld [vmem:[%s1411_s2 + $0x18] sm:$0xff]  ;;  %v760_v6 = vld [vmem:[%s1411_s2 + $0x10] sm:$0xff] }
  0x65   : > { %v759_v7 = vld [vmem:[%s1411_s2 + $0x8] sm:$0xff]  ;;  %v758_v8 = vld [vmem:[%s1411_s2] sm:$0xff]  ;;  %v757_v9 = vld [vmem:[%s1600_s6] sm:$0xff] }
  0x68   : > { %454 = vmatpush.bf16.msra.mxu0 %v764_v2  ;;  %v379_v10 = vld [vmem:[#allocation2] sm:$0xff] }
  0x69   : > { %v380_v13 = vld [vmem:[#allocation2 + $0x8] sm:$0xff]  ;;  %p743_p5 = scmp.ne.s32.totalorder %s1601_s5, 1 }
  0x6c   : > { %455 = vmatpush.bf16.msra.mxu0 %v763_v3 }
  0x70   : > { %456 = vmatpush.bf16.msra.mxu0 %v762_v4 }
  0x74   : > { %457 = vmatpush.bf16.msra.mxu0 %v761_v5 }
  0x78   : > { %458 = vmatpush.bf16.msra.mxu0 %v760_v6 }
  0x7c   : > { %459 = vmatpush.bf16.msra.mxu0 %v759_v7 }
  0x80   : > { %460 = vmatpush.bf16.msra.mxu0 %v758_v8 }
  0x83   : > { %461 = vmatmul.bf16.vlgmr.msra.gmra.mxu0 %v757_v9 }
 0x100   : > { %v462_v11 = vpop.f32.mrf.mxu0 }
 0x101   : > { %v467_v12 = vadd.f32 %v462_v11, %v379_v10 }
 0x103   : > { %469 = vst [vmem:[#allocation2] sm:$0xff] %v467_v12 }
 0x107   : > { %474 = sbr.rel (%p743_p5) target bundleno = 410 (0x19a), region = 56 }
 0x108   : > { %v464_v14 = vpop.f32.mrf.mxu0 }
 0x109   : > { %v468_v15 = vadd.f32 %v464_v14, %v380_v13 }
 0x10b   : > { %470 = vst [vmem:[#allocation2 + $0x8] sm:$0xff] %v468_v15 }
 0x10c   : > { %v485_v16 = vld [vmem:[%s1433_s0] sm:$0x3]  ;;  %vm495_vm0 = vcmask 1041408   ;;  %vm491_vm1 = vcmask 31744  }
 0x10d   : > { %v497_v17 = vsel %vm495_vm0, %v485_v16, 0  ;;  %v766_v18 = vld [vmem:[%s1438_s13] sm:$0xff] }
 0x10e   : > { %506 = vmatpush.bf16.msra.mxu0 %v497_v17  ;;  %v922_v19 = vld [vmem:[%s360_s4] ss:$0 sm:$0xff] }
 0x10f   : > { %v475_v20 = vld [vmem:[#allocation2] sm:$0xff] }
 0x110   : > { %v481_v21 = vadd.f32 %v922_v19, %v475_v20 }
 0x111   : > { %748 = vmatmul.msk.bf16.vlgmr.msra.gmra.mxu0 %vm491_vm1, %v766_v18 }
 0x112   : > { %v476_v24 = vld [vmem:[#allocation2 + $0x8] sm:$0xff] }
 0x113   : > { %v482_v25 = vadd.f32 %v922_v19, %v476_v24 }
 0x18e   : > { %v508_v22 = vpop.f32.mrf.mxu0 }
 0x18f   : > { %v513_v23 = vadd.f32 %v508_v22, %v481_v21 }
 0x191   : > { %515 = vst [vmem:[%s1440_s1] sm:$0xff] %v513_v23 }
 0x196   : > { %v510_v26 = vpop.f32.mrf.mxu0 }
 0x197   : > { %v514_v27 = vadd.f32 %v510_v26, %v482_v25 }
 0x199   : > { %516 = vst [vmem:[%s1440_s1 + $0x8] sm:$0xff] %v514_v27 }
 0x19a PF: > { %s1603_s13 = sld [smem:[#allocation15_spill]]  ;;  %s532_s17 = sshll.u32 %s1440_s1, 4  ;;  %s533_s17 = int_to_ptr.vmem [resolvable:$true] %s532_s17 }
 0x19b   : > { %s1604_s12 = sld [smem:[#allocation14_spill]]  ;;  %s1608_s26 = sand.u32 1, %s1093_s19  }
 0x19c   : > { %s1606_s7 = sld [smem:[#allocation29_spill]]  ;;  %s518_s14 = scalar_lea.sflag [#allocation5], %s1608_s26 }
 0x1a0   : > { %s767_s28 = sshll.u32 %s1603_s13, 2 }
 0x1a1   : > { %s529_s9 = sadd.s32 %s1604_s12, %s767_s28 }
 0x1a2   : > { %s752_s4 = sshll.u32 %s529_s9, 3  ;;  %s1607_s16 = smov %s1606_s7 }
 0x1a3   : > { %s531_s27 = scalar_lea.hbm %s1606_s7, %s752_s4  ;;  %s1003_s1 = scalar_lea.hbm %s1607_s16, 128 }
 0x1a4   : > { %s534_s0 = sshll.u32 %s531_s27, 4  ;;  %s535_s0 = int_to_ptr.hbm [resolvable:$true] %s534_s0 }
 0x1a5   : > { %s997_s6 = sshra.s32 %s535_s0, 4  ;;  %s998_s6 = int_to_ptr.hbm [resolvable:$true] %s997_s6 }
 0x1a6   : > { %s999_s5 = scalar_lea.hbm %s998_s6, 16  ;;  %p1004_p11 = scmp.lt.s32.totalorder %s998_s6, %s1607_s16 }
 0x1a7   : > { %p1000_p9 = scmp.ne.s32.totalorder %s998_s6, %s999_s5  ;;  %p1005_p13 = scmp.lt.s32.totalorder %s1003_s1, %s999_s5 }
 0x1a9   : > { %p1001_p2 = pnand %p1000_p9, %p1361_p4  ;;  %p1006_p1 = por %p1005_p13, %p1004_p11 }
 0x1ab   : > { %p1002_p10 = pneg %p1001_p2 }
 0x1ad   : > { %p1007_p3 = pnand %p1006_p1, %p1002_p10 }
 0x1af   : > { %1010 = shalt.err (!%p1007_p3)
}
 0x1b0   : > { %s1155_s12 = smov 128   ;;  %s1156_s28 = smov 256  }
 0x1b1   : > { %s1157_s9 = smov 8  }
 0x1b2   : > { %772 = dma.vmem_to_hbm [thread:$0]  (%p1361_p4), %s533_s17, 256, %s535_s0, %s518_s14, %s1155_s12, %s1156_s28, %s1157_s9  }
 0x1b3 PF: > { %p786_p0 = scmp.ge.s32.totalorder %s1149_s8, 2  ;;  %s549_s4 = sand.u32 1, %s1089_s18  }
 0x1b4   : > { %s550_s3 = scalar_lea.sflag [#allocation5], %s549_s4 }
 0x1b5   : > { %p782_p8 = pnand %p786_p0, %p1384_p6 }
 0x1b7   : > { %p783_p7 = pneg %p782_p8 }
 0x1b9   : > { %1084 = dma.done.wait (%p783_p7), %s550_s3, 256  }
 0x1ba   : > { %1086 = vsyncadd (%p783_p7), %s550_s3, 4294967040  ;;  %s24_s8 = sadd.s32 1, %s1149_s8   ;;  %s1610_s17 = sld [smem:[#allocation22_spill]] }
 0x1bb   : > { %p1486_p12 = scmp.ge.s32.totalorder %s24_s8, 18   ;;  %s1611_s7 = sld [smem:[#allocation12_spill]] }
 0x1bc   : > { %s1612_s26 = sld [smem:[#allocation23_spill]]  ;;  %s1618_s18 = smov %s1093_s19 }
 0x1bd   : > { %s1613_s28 = sld [smem:[#allocation16_spill]]  ;;  %s1619_s19 = smov %s1097_s20 }
 0x1be   : > { %s1614_s15 = sld [smem:[#allocation17_spill]]  ;;  %s1620_s20 = smov %s1382_s29 }
 0x1bf   : > { %s1615_s0 = sld [smem:[#allocation18_spill]]  ;;  %s1621_s21 = smov %s1105_s22 }
 0x1c0   : > { %s1616_s6 = sld [smem:[#allocation19_spill]]  ;;  %s1622_s22 = smov %s1109_s23 }
 0x1c1   : > { %s1617_s14 = sld [smem:[#allocation21_spill]]  ;;  %s1623_s23 = smov %s1610_s17 }
 0x1c2   : > { %s1624_s24 = smov %s1117_s25  ;;  %s1625_s25 = smov %s1611_s7 }
 0x1c3   : > { %s1626_s27 = smov %s1137_s30  ;;  %23 = sbr.rel (!%p1486_p12) target bundleno = 20 (0x14), region = 115 }
 0x1c4   : > { %s1627_s29 = smov %s1614_s15 }
 0x1c5   : > { %s1628_s30 = smov %s1615_s0 }
 0x1c7   : > { %s1629_s7 = smov %s1617_s14 }
 0x1c8   :  { %556 = vsyncpa [#allocation4], 1 }
 0x1c9   :  { %558 = vsyncpa [#allocation4 + $0x1], 1 }
 0x1ca   :  { %559 = vsyncpa [#allocation7], 1 }
 0x1cb   :  { %561 = vsyncpa [#allocation7 + $0x1], 1 }
 0x1cc   :  { %562 = vsyncpa [#allocation5], 1 }
 0x1cd   :  { %564 = vsyncpa [#allocation5 + $0x1], 1 }

</bundles_post_ra>
